<compile_context>
chip_gen: v5e
topology: v5e:2x2
jax: 0.10.0
libtpu: 0.0.40
codegen_flags: <defaults>
</compile_context>

<pallas_src>
import functools
from math import floor

import jax
import jax.numpy as jnp
from jax.experimental import pallas as pl
from jax.experimental.pallas import tpu as pltpu


def _coefficient_to_num_samples(sample_size, mixer_coefficients):
    # Direct port of CompositeSampler._coefficient_to_num_samples
    mixed_samples = []
    samples_added = 0
    for coeff in mixer_coefficients:
        if len(mixed_samples) == len(mixer_coefficients) - 1:
            mixed_samples += [sample_size - samples_added]
            break
        sample_slice = floor(sample_size * coeff)
        samples_added += sample_slice
        mixed_samples += [sample_slice]
    assert sum(mixed_samples) == sample_size
    return mixed_samples


def composite_sampler_kernel(x_ref, w_ref, noise_ref, scale_ref, o_ref, acc_ref,
                             *, n_a, n_b):
    """Fused sampling kernel; grid axis 0 is the F (feature) reduction.

    x_ref     : (B, tk)     bf16 flattened-input tile
    w_ref     : (tk, Hp)    bf16 projection-weight tile (Hp = 128-padded max_h)
    noise_ref : (n_a, Hp)   f32 sampler-A samples (batch independent)
    scale_ref : (n_b, Hp)   f32 lane-replicated per-sample scales (sampler B)
    o_ref     : (B, S, Hp)  output, rows [0, n_a) from A, rows [n_a, S) from B
    acc_ref   : (B, Hp)     f32 VMEM accumulator for the projection
    """
    k = pl.program_id(0)

    @pl.when(k == 0)
    def _init():
        acc_ref[...] = jnp.zeros_like(acc_ref)

    # MXU: bf16 x bf16 -> f32 accumulate over the F reduction.
    acc_ref[...] += jnp.dot(x_ref[...], w_ref[...],
                            preferred_element_type=jnp.float32)

    @pl.when(k == pl.num_programs(0) - 1)
    def _finalize():
        B, H = acc_ref.shape
        proj = acc_ref[...]                                       # (B, Hp) f32
        if n_a > 0:
            # Sampler A: broadcast over batch, static slice write.
            noise = noise_ref[...]                                # (n_a, Hp)
            o_ref[:, :n_a, :] = jnp.broadcast_to(
                noise[None, :, :], (B, n_a, H)).astype(o_ref.dtype)
        if n_b > 0:
            # Sampler B: per-sample scale (f32 elementwise), static slice write.
            scaled = scale_ref[...][None, :, :] * proj[:, None, :]  # (B, n_b, Hp)
            o_ref[:, n_a:, :] = scaled.astype(o_ref.dtype)


def composite_sampler_forward(x, y, model, sample_size, batch_size,
                              mixer_coefficients, h_dims, params):
    """JAX/Pallas equivalent of CompositeSampler.forward.

    Returns (empty_tensor, list_of_samples); each list element has shape
    (batch_size * sample_size, h), matching th.cat(...).flatten(0,1).
    """
    del y, model  # abstract sampler deps; the concrete samplers only use x
    n_samplers = 2
    assert len(mixer_coefficients) == n_samplers, \
        '[ERROR] Each sampler must have a mixer coefficient'
    assert abs(sum(mixer_coefficients) - 1.0) < 1e-08, \
        '[ERROR] mixer coefficeints need to sum to one.'
    n_a, n_b = _coefficient_to_num_samples(sample_size, mixer_coefficients)

    B = x.shape[0]
    assert B == batch_size
    S = sample_size
    max_h = max(h_dims)
    H_pad = ((max_h + 127) // 128) * 128                      # lane-dense output

    x_flat = x.reshape(B, -1)
    F_dim = x_flat.shape[1]
    x_bf16 = x_flat.astype(jnp.bfloat16)

    # Pad projection weights / noise to the lane-dense width (zeros are inert).
    w = params['w'][:, :max_h]
    w_pad = jnp.pad(w, ((0, 0), (0, H_pad - max_h))).astype(jnp.bfloat16)

    if n_a > 0:
        noise_in = jnp.pad(params['noise'][:n_a, :max_h],
                           ((0, 0), (0, H_pad - max_h))).astype(jnp.float32)
    else:
        noise_in = jnp.zeros((1, H_pad), jnp.float32)         # dummy, unused

    scale = jnp.asarray(params['scale']).reshape(-1)
    if n_b > 0:
        # Lane-replicated scale: avoids a (S,1) VMEM tile + cross-lane broadcast.
        scale_in = jnp.broadcast_to(scale[:n_b, None],
                                    (n_b, H_pad)).astype(jnp.float32)
    else:
        scale_in = jnp.zeros((1, H_pad), jnp.float32)         # dummy, unused

    # Tile the F reduction; whole-F fallback if it does not tile evenly.
    tk = 512 if (F_dim % 512 == 0) else F_dim
    grid = (F_dim // tk,)

    out = pl.pallas_call(
        functools.partial(composite_sampler_kernel, n_a=n_a, n_b=n_b),
        out_shape=jax.ShapeDtypeStruct((B, S, H_pad), jnp.float32),
        grid_spec=pltpu.PrefetchScalarGridSpec(
            num_scalar_prefetch=0,
            grid=grid,
            in_specs=[
                pl.BlockSpec((B, tk), lambda k: (0, k)),                # x
                pl.BlockSpec((tk, H_pad), lambda k: (k, 0)),            # W
                pl.BlockSpec((noise_in.shape[0], H_pad), lambda k: (0, 0)),
                pl.BlockSpec((scale_in.shape[0], H_pad), lambda k: (0, 0)),
            ],
            out_specs=pl.BlockSpec((B, S, H_pad), lambda k: (0, 0, 0)),
            scratch_shapes=[pltpu.VMEM((B, H_pad), jnp.float32)],
        ),
        compiler_params=pltpu.CompilerParams(
            dimension_semantics=("arbitrary",),       # F is a reduction axis
            vmem_limit_bytes=32 * 1024 * 1024,
        ),
    )(x_bf16, w_pad, noise_in, scale_in)

    # flatten(0, 1): (B, S, Hp) -> (B*S, Hp), contiguous reshape.
    samples_flat = out.reshape(B * S, H_pad)

    # The concrete samplers use column-prefix weights/noise, so each h_dim's
    # samples are exactly the first h columns of the single max_h result.
    all_samples = [samples_flat[:, :h] for h in h_dims]

    # th.Tensor() -> empty float tensor
    return jnp.zeros((0,), jnp.float32), all_samples


if __name__ == "__main__":
    key = jax.random.PRNGKey(0)
    kx, kw, kn = jax.random.split(key, 3)

    # Small shapes consistent with the module's forward
    batch_size = 2
    C, Himg, Wimg = 4, 16, 16
    F = C * Himg * Wimg
    sample_size = 8
    h_dims = (32, 64)
    max_h = max(h_dims)
    mixer_coefficients = [0.4, 0.6]   # -> mixed_samples = [3, 5]

    x = jax.random.normal(kx, (batch_size, C, Himg, Wimg), dtype=jnp.float32)
    y = jnp.zeros((batch_size,), jnp.int32)   # unused by the concrete samplers
    model = None                              # abstract; not needed here

    params = {
        'w': jax.random.normal(kw, (F, max_h), dtype=jnp.float32) / jnp.sqrt(F),
        'noise': jax.random.normal(kn, (sample_size, max_h), dtype=jnp.float32),
        'scale': 1.0 / (jnp.arange(sample_size, dtype=jnp.float32) + 1.0),
    }

    empty, all_samples = composite_sampler_forward(
        x, y, model, sample_size, batch_size, mixer_coefficients, h_dims, params)

    jax.block_until_ready(empty)
    for s in all_samples:
        jax.block_until_ready(s)

    # Pure-JAX reference check (same bf16-rounded matmul inputs).
    n_a, n_b = _coefficient_to_num_samples(sample_size, mixer_coefficients)
    x_flat = x.reshape(batch_size, -1)
    xb = x_flat.astype(jnp.bfloat16).astype(jnp.float32)
    wb = params['w'].astype(jnp.bfloat16).astype(jnp.float32)
    proj_ref = xb @ wb                                          # (B, max_h)
    for s, h in zip(all_samples, h_dims):
        assert s.shape == (batch_size * sample_size, h), s.shape
        noise_part = jnp.broadcast_to(params['noise'][:n_a, :h][None],
                                      (batch_size, n_a, h))
        proj_part = params['scale'][:n_b][None, :, None] * proj_ref[:, None, :h]
        expected = jnp.concatenate([noise_part, proj_part], axis=1)
        expected = expected.reshape(batch_size * sample_size, h)
        assert jnp.allclose(s, expected, atol=5e-2, rtol=5e-2), \
            float(jnp.max(jnp.abs(s - expected)))

    # TODO(synk): the abstract `samplers` / `model` submodules have no concrete
    # definition in the reference; two deterministic concrete samplers are used.
    print("KERNEL_OK")
</pallas_src>

<mosaic_0001>
module attributes {stable_mosaic.version = 11 : i64} {
  func.func @composite_sampler_kernel(%arg0: i32, %arg1: memref<2x512xbf16, #tpu.memory_space<vmem>>, %arg2: memref<512x128xbf16, #tpu.memory_space<vmem>>, %arg3: memref<3x128xf32, #tpu.memory_space<vmem>>, %arg4: memref<5x128xf32, #tpu.memory_space<vmem>>, %arg5: memref<2x8x128xf32, #tpu.memory_space<vmem>>, %arg6: memref<2x128xf32, #tpu.memory_space<vmem>>) attributes {dimension_semantics = [#tpu.dimension_semantics<arbitrary>], iteration_bounds = array<i64: 2>, scalar_prefetch = 0 : i64, scratch_operands = 1 : i64, tpu.core_type = #tpu.core_type<tc>, window_params = [{transform_indices = @transform_0, window_bounds = array<i64: 2, 512>}, {transform_indices = @transform_1, window_bounds = array<i64: 512, 128>}, {pipeline_mode = #tpu.pipeline_mode<synchronous>, transform_indices = @transform_2, window_bounds = array<i64: 3, 128>}, {pipeline_mode = #tpu.pipeline_mode<synchronous>, transform_indices = @transform_3, window_bounds = array<i64: 5, 128>}, {pipeline_mode = #tpu.pipeline_mode<synchronous>, transform_indices = @transform_4, window_bounds = array<i64: 2, 8, 128>}]} {
    %c0_i32 = arith.constant 0 : i32
    %0 = arith.cmpi eq, %arg0, %c0_i32 : i32
    %1 = arith.extui %0 : i1 to i32
    %c0_i32_0 = arith.constant 0 : i32
    %2 = arith.cmpi ne, %1, %c0_i32_0 : i32
    scf.if %2 {
      %cst_9 = arith.constant 0.000000e+00 : f32
      %12 = vector.broadcast %cst_9 : f32 to vector<2x128xf32>
      %c0_10 = arith.constant 0 : index
      %c0_11 = arith.constant 0 : index
      %13 = vector.load %arg6[%c0_10, %c0_11] : memref<2x128xf32, #tpu.memory_space<vmem>>, vector<2x128xf32>
      tpu.vector_store %arg6[%c0_10, %c0_11], %12 {strides = array<i32>} : memref<2x128xf32, #tpu.memory_space<vmem>>, vector<2x128xf32>,
    } else {
    }
    %c0 = arith.constant 0 : index
    %c0_1 = arith.constant 0 : index
    %3 = vector.load %arg6[%c0, %c0_1] : memref<2x128xf32, #tpu.memory_space<vmem>>, vector<2x128xf32>
    %c0_2 = arith.constant 0 : index
    %c0_3 = arith.constant 0 : index
    %4 = vector.load %arg1[%c0_2, %c0_3] : memref<2x512xbf16, #tpu.memory_space<vmem>>, vector<2x512xbf16>
    %c0_4 = arith.constant 0 : index
    %c0_5 = arith.constant 0 : index
    %5 = vector.load %arg2[%c0_4, %c0_5] : memref<512x128xbf16, #tpu.memory_space<vmem>>, vector<512x128xbf16>
    %cst = arith.constant dense<0.000000e+00> : vector<2x128xf32>
    %6 = tpu.matmul %4, %5, %cst {dimension_numbers = #tpu.dot_dimension_numbers<[1], [0], [0], [1], [0, 0, 1, 1], [], []>} : vector<2x512xbf16>, vector<512x128xbf16>, vector<2x128xf32> -> vector<2x128xf32>
    %7 = arith.addf %3, %6 : vector<2x128xf32>
    %c0_6 = arith.constant 0 : index
    %c0_7 = arith.constant 0 : index
    %8 = vector.load %arg6[%c0_6, %c0_7] : memref<2x128xf32, #tpu.memory_space<vmem>>, vector<2x128xf32>
    tpu.vector_store %arg6[%c0_6, %c0_7], %7 {strides = array<i32>} : memref<2x128xf32, #tpu.memory_space<vmem>>, vector<2x128xf32>,
    %c1_i32 = arith.constant 1 : i32
    %9 = arith.cmpi eq, %arg0, %c1_i32 : i32
    %10 = arith.extui %9 : i1 to i32
    %c0_i32_8 = arith.constant 0 : i32
    %11 = arith.cmpi ne, %10, %c0_i32_8 : i32
    scf.if %11 {
      %c0_9 = arith.constant 0 : index
      %c0_10 = arith.constant 0 : index
      %12 = vector.load %arg6[%c0_9, %c0_10] : memref<2x128xf32, #tpu.memory_space<vmem>>, vector<2x128xf32>
      %c0_11 = arith.constant 0 : index
      %c0_12 = arith.constant 0 : index
      %13 = vector.load %arg3[%c0_11, %c0_12] : memref<3x128xf32, #tpu.memory_space<vmem>>, vector<3x128xf32>
      %14 = vector.shape_cast %13 : vector<3x128xf32> to vector<1x3x128xf32>
      %15 = vector.shape_cast %14 : vector<1x3x128xf32> to vector<1x3x128xf32>
      %16 = vector.broadcast %15 : vector<1x3x128xf32> to vector<2x3x128xf32>
      %c0_13 = arith.constant 0 : index
      %c0_14 = arith.constant 0 : index
      %c0_15 = arith.constant 0 : index
      %17 = vector.load %arg5[%c0_13, %c0_14, %c0_15] : memref<2x8x128xf32, #tpu.memory_space<vmem>>, vector<2x3x128xf32>
      tpu.vector_store %arg5[%c0_13, %c0_14, %c0_15], %16 {strides = array<i32>} : memref<2x8x128xf32, #tpu.memory_space<vmem>>, vector<2x3x128xf32>,
      %c0_16 = arith.constant 0 : index
      %c0_17 = arith.constant 0 : index
      %18 = vector.load %arg4[%c0_16, %c0_17] : memref<5x128xf32, #tpu.memory_space<vmem>>, vector<5x128xf32>
      %19 = vector.shape_cast %18 : vector<5x128xf32> to vector<1x5x128xf32>
      %20 = vector.shape_cast %12 : vector<2x128xf32> to vector<2x1x128xf32>
      %21 = vector.broadcast %19 : vector<1x5x128xf32> to vector<2x5x128xf32>
      %22 = vector.broadcast %20 : vector<2x1x128xf32> to vector<2x5x128xf32>
      %23 = arith.mulf %21, %22 : vector<2x5x128xf32>
      %c0_18 = arith.constant 0 : index
      %c3 = arith.constant 3 : index
      %c0_19 = arith.constant 0 : index
      %24 = vector.load %arg5[%c0_18, %c3, %c0_19] : memref<2x8x128xf32, #tpu.memory_space<vmem>>, vector<2x5x128xf32>
      tpu.vector_store %arg5[%c0_18, %c3, %c0_19], %23 {strides = array<i32>} : memref<2x8x128xf32, #tpu.memory_space<vmem>>, vector<2x5x128xf32>,
    } else {
    }
    return
  }
  func.func @transform_0(%arg0: i32) -> (i32, i32) {
    %c0_i32 = arith.constant 0 : i32
    %c0_i32_0 = arith.constant 0 : i32
    return %c0_i32, %arg0 : i32, i32
  }
  func.func @transform_1(%arg0: i32) -> (i32, i32) {
    %c0_i32 = arith.constant 0 : i32
    %c0_i32_0 = arith.constant 0 : i32
    return %arg0, %c0_i32 : i32, i32
  }
  func.func @transform_2(%arg0: i32) -> (i32, i32) {
    %c0_i32 = arith.constant 0 : i32
    %c0_i32_0 = arith.constant 0 : i32
    %c0_i32_1 = arith.constant 0 : i32
    return %c0_i32, %c0_i32_0 : i32, i32
  }
  func.func @transform_3(%arg0: i32) -> (i32, i32) {
    %c0_i32 = arith.constant 0 : i32
    %c0_i32_0 = arith.constant 0 : i32
    %c0_i32_1 = arith.constant 0 : i32
    return %c0_i32, %c0_i32_0 : i32, i32
  }
  func.func @transform_4(%arg0: i32) -> (i32, i32, i32) {
    %c0_i32 = arith.constant 0 : i32
    %c0_i32_0 = arith.constant 0 : i32
    %c0_i32_1 = arith.constant 0 : i32
    %c0_i32_2 = arith.constant 0 : i32
    return %c0_i32, %c0_i32_0, %c0_i32_1 : i32, i32, i32
  }
}

</mosaic_0001>

<bundles_post_ra>
// kernel: tpu_custom_call.1
= control target key start
LH: loop header
LB: loop body
LE: loop exit
PB: predicated region body
PF: predicated region fallthrough
CT: control target
= control target key end

     0   :  { %9 = vsyncpa [#allocation4], 0  ;;  %s1396_s0 = inlined_call_operand.hbm [shape: bf16[2,1024], index: 0, kind: input, shape index: {}]   ;;  %s1397_s1 = inlined_call_operand.hbm [shape: bf16[1024,128], index: 1, kind: input, shape index: {}]   ;;  %s1398_s2 = inlined_call_operand.hbm [shape: f32[3,128], index: 2, kind: input, shape index: {}]   ;;  %s1399_s3 = inlined_call_operand.hbm [shape: f32[5,128], index: 3, kind: input, shape index: {}]   ;;  %s1400_s4 = inlined_call_operand.hbm [shape: f32[2,8,128], index: 4, kind: output, shape index: {}]  }
   0x1   :  { %11 = vsyncpa [#allocation4 + $0x1], 0 }
   0x2   :  { %12 = vsyncpa [#allocation7], 0 }
   0x3   :  { %14 = vsyncpa [#allocation7 + $0x1], 0 }
   0x4   :  { %15 = vsyncpa [#allocation10], 0 }
   0x5   :  { %16 = vsyncpa [#allocation5], 0  ;;  %s1217_s15 = smov 0   ;;  %s1219_s16 = smov 0  }
   0x6   :  { %s1221_s17 = smov 0   ;;  %s1223_s18 = smov 0  }
   0x7 LB: > { %s1236_s19 = sadd.s32 4294967295, %s1182_s18   ;;  %p42_p0 = scmp.ne.s32.totalorder %s1174_s16, %s1170_s15  ;;  %s1182_s18 = sphi %s1223_s18, %s1407_s18   ;;  %s1178_s17 = sphi %s1221_s17, %s1406_s17   ;;  %s1174_s16 = sphi %s1219_s16, %s1405_s16   ;;  %s1170_s15 = sphi %s1217_s15, %s1404_s15  }
   0x8   : > { %p43_p1 = scmp.eq.s32.totalorder %s1236_s19, 0  ;;  %p726_p2 = scmp.ge.s32.totalorder %s1182_s18, 1 }
   0x9   : > { %p142_p3 = scmp.lt.s32.totalorder %s1182_s18, 3  ;;  %p727_p4 = scmp.ne.s32.totalorder %s1236_s19, 0 }
   0xa   : > { %p1245_p5 = por %p43_p1, %p42_p0  ;;  %s154_s23 = sshll.u32 %s1398_s2, 4  ;;  %s155_s23 = int_to_ptr.hbm [resolvable:$true] %s154_s23 }
   0xb   : > { %p1252_p6 = pnand %p726_p2, %p142_p3  ;;  %s1184_s25 = smov [#allocation8]  }
   0xc   : > { %s156_s26 = sshll.u32 %s1184_s25, 4  ;;  %s166_s29 = sshll.u32 %s1399_s3, 4  ;;  %s157_s26 = int_to_ptr.vmem [resolvable:$true] %s156_s26  ;;  %s167_s29 = int_to_ptr.hbm [resolvable:$true] %s166_s29 }
   0xd   : > { %p923_p7 = pneg %p1252_p6  ;;  %s1185_s30 = smov [#allocation9]  }
   0xe   : > { %s168_s5 = sshll.u32 %s1185_s30, 4  ;;  %s1264_s6 = sadd.s32 1, %s1182_s18   ;;  %s169_s5 = int_to_ptr.vmem [resolvable:$true] %s168_s5 }
   0xf   : > { %p924_p8 = pnand %p923_p7, %p43_p1  ;;  %s29_s7 = sadd.s32 1, %s1178_s17 }
  0x10   : > { %s26_s8 = ssub.s32 %s1182_s18, %s1264_s6  ;;  %p36_p9 = scmp.ne.s32.totalorder %s1178_s17, %s1174_s16 }
  0x11   : > { %926 = dma.hbm_to_vmem [thread:$0]  (!%p924_p8), %s155_s23, 64, %s157_s26, [#allocation7]  }
  0x12   : > { %929 = dma.hbm_to_vmem [thread:$0]  (!%p924_p8), %s167_s29, 128, %s169_s5, [#allocation10]  }
  0x13   : > { %p27_p10 = scmp.eq.s32.totalorder %s26_s8, 0  ;;  %p37_p11 = scmp.eq.s32.totalorder %s1182_s18, 0 }
  0x14   : > { %p939_p12 = scmp.lt.s32.totalorder %s1182_s18, 2  ;;  %s1274_s9 = sand.u32 1, %s1178_s17  }
  0x15   : > { %s1277_s10 = scalar_select %p27_p10, %s1178_s17, %s29_s7  }
  0x16   : > { %p38_p13 = por %p37_p11, %p36_p9  ;;  %s730_s11 = sshll.u32 %s1274_s9, 2 }
  0x17   : > { %s731_s12 = sshll.u32 %s1182_s18, 2  ;;  %s183_s22 = scalar_lea.vmem [#allocation3], %s730_s11 }
  0x18   : > { %s187_s15 = scalar_lea.hbm %s1396_s0, %s731_s12  ;;  %s191_s23 = sshll.u32 %s183_s22, 4  ;;  %s192_s23 = int_to_ptr.vmem [resolvable:$true] %s191_s23 }
  0x19   : > { %s189_s21 = sshll.u32 %s187_s15, 4  ;;  %p1284_p0 = pnand %p939_p12, %p38_p13  ;;  %s190_s21 = int_to_ptr.hbm [resolvable:$true] %s189_s21 }
  0x1a   : > { %s732_s26 = sshll.u32 %s1274_s9, 8  ;;  %s198_s27 = sand.u32 1, %s1182_s18  }
  0x1b   : > { %s202_s28 = scalar_lea.vmem [#allocation6], %s732_s26  ;;  %s180_s30 = scalar_lea.sflag [#allocation4], %s1274_s9 }
  0x1c   : > { %s210_s29 = sshll.u32 %s202_s28, 4  ;;  %s1044_s5 = sshra.s32 %s190_s21, 4  ;;  %s1045_s5 = int_to_ptr.hbm [resolvable:$true] %s1044_s5  ;;  %s211_s29 = int_to_ptr.vmem [resolvable:$true] %s210_s29 }
  0x1d   : > { %s1046_s7 = scalar_lea.hbm %s1045_s5, 4  ;;  %p1048_p3 = pneg %p1284_p0 }
  0x1e   : > { %p1047_p2 = scmp.ne.s32.totalorder %s1045_s5, %s1046_s7  ;;  %s1051_s12 = scalar_lea.hbm %s1396_s0, 8 }
  0x1f   : > { %p1052_p9 = scmp.lt.s32.totalorder %s1045_s5, %s1396_s0  ;;  %p1053_p10 = scmp.lt.s32.totalorder %s1051_s12, %s1046_s7 }
  0x20   : > { %p1049_p7 = pnand %p1048_p3, %p1047_p2 }
  0x21   : > { %p1054_p11 = por %p1053_p10, %p1052_p9 }
  0x22   : > { %p1050_p8 = pneg %p1049_p7 }
  0x24   : > { %p1055_p12 = pnand %p1054_p11, %p1050_p8 }
  0x26   : > { %1058 = shalt.err (!%p1055_p12)
}
  0x27   : > { %933 = dma.hbm_to_vmem [thread:$0]  (!%p1284_p0), %s190_s21, 64, %s192_s23, %s180_s30  }
  0x28   : > { %s874_s9 = sshll.u32 %s1182_s18, 8  ;;  %s199_s8 = scalar_lea.sflag [#allocation7], %s198_s27 }
  0x29   : > { %s207_s26 = scalar_lea.hbm %s1397_s1, %s874_s9  ;;  %s1081_s21 = scalar_lea.hbm %s1397_s1, 512 }
  0x2a   : > { %s208_s28 = sshll.u32 %s207_s26, 4  ;;  %s209_s28 = int_to_ptr.hbm [resolvable:$true] %s208_s28 }
  0x2b   : > { %s1074_s11 = sshra.s32 %s209_s28, 4  ;;  %s1075_s11 = int_to_ptr.hbm [resolvable:$true] %s1074_s11 }
  0x2c   : > { %s1076_s5 = scalar_lea.hbm %s1075_s11, 256  ;;  %p1082_p8 = scmp.lt.s32.totalorder %s1075_s11, %s1397_s1 }
  0x2d   : > { %p1077_p13 = scmp.ne.s32.totalorder %s1075_s11, %s1076_s5  ;;  %p1083_p9 = scmp.lt.s32.totalorder %s1081_s21, %s1076_s5 }
  0x2f   : > { %p1079_p2 = pnand %p1077_p13, %p1048_p3  ;;  %p1084_p10 = por %p1083_p9, %p1082_p8 }
  0x31   : > { %p1080_p7 = pneg %p1079_p2 }
  0x33   : > { %p1085_p11 = pnand %p1084_p10, %p1080_p7 }
  0x35   : > { %1088 = shalt.err (!%p1085_p11)
}
  0x36   : > { %s1186_s27 = smov 64   ;;  %s1187_s30 = smov 4  }
  0x37   : > { %936 = dma.hbm_to_vmem [thread:$0]  (!%p1284_p0), %s209_s28, 4096, %s211_s29, %s199_s8, %s1186_s27, %s1186_s27, %s1187_s30  }
  0x38   : > { %222 = sbr.rel (%p1252_p6) target bundleno = 269 (0x10d), region = 36  ;;  %s224_s13 = sand.u32 (!%p1252_p6), 1, %s1174_s16  }
  0x39   : > { %s736_s14 = sshll.u32 (!%p1252_p6), %s224_s13, 2  ;;  %s225_s9 = scalar_lea.sflag (!%p1252_p6), [#allocation4], %s224_s13 }
  0x3a   : > { %s1322_s15 = scalar_lea.vmem (!%p1252_p6), [#allocation3], %s736_s14 }
  0x3d   : > { %1149 = dma.done.wait (%p1245_p5), %s225_s9, 64  }
  0x3e   : > { %1151 = vsyncadd (%p1245_p5), %s225_s9, 4294967232  ;;  %s234_s22 = sand.u32 1, %s1236_s19   ;;  %s737_s25 = sshll.u32 %s224_s13, 8 }
  0x3f   : > { %s235_s29 = scalar_lea.sflag [#allocation7], %s234_s22  ;;  %s1329_s26 = scalar_lea.vmem [#allocation6], %s737_s25 }
  0x40   : > { %1153 = dma.done.wait (%p1245_p5), %s235_s29, 4096  }
  0x41   : > { %1155 = vsyncadd (%p1245_p5), %s235_s29, 4294963200 }
  0x42   : > { %1157 = dma.done.wait (%p43_p1), [#allocation7], 64  }
  0x43   : > { %1159 = vsyncadd (%p43_p1), [#allocation7], 4294967232 }
  0x44   : > { %1161 = dma.done.wait (%p43_p1), [#allocation10], 128  }
  0x45   : > { %1163 = vsyncadd (%p43_p1), [#allocation10], 4294967168  ;;  %279 = sbr.rel (%p727_p4) target bundleno = 76 (0x4c), region = 56 }
  0x4a   : > { %v1188_v0 = vmov 0.0  }
  0x4b   : > { %280 = vst [vmem:[#allocation2] sm:$0x3] %v1188_v0 }
  0x4c PF: > { %v882_v1 = vld [vmem:[%s1329_s26 + $0x38] sm:$0xff]  ;;  %v881_v5 = vld [vmem:[%s1329_s26 + $0x30] sm:$0xff]  ;;  %v880_v9 = vld [vmem:[%s1329_s26 + $0x28] sm:$0xff]  ;;  %p869_p1 = scmp.ne.s32.totalorder %s1236_s19, 1 }
  0x4d   : > { %v890_v2 = vld [vmem:[%s1329_s26 + $0x78] sm:$0xff]  ;;  %549 = vmatpush.bf16.msra.mxu0 %v882_v1  ;;  %v889_v6 = vld [vmem:[%s1329_s26 + $0x70] sm:$0xff]  ;;  %v888_v10 = vld [vmem:[%s1329_s26 + $0x68] sm:$0xff] }
  0x4e   : > { %v898_v3 = vld [vmem:[%s1329_s26 + $0xb8] sm:$0xff]  ;;  %562 = vmatpush.bf16.msra.mxu1 %v890_v2  ;;  %v897_v7 = vld [vmem:[%s1329_s26 + $0xb0] sm:$0xff]  ;;  %v896_v11 = vld [vmem:[%s1329_s26 + $0xa8] sm:$0xff] }
  0x4f   : > { %v906_v4 = vld [vmem:[%s1329_s26 + $0xf8] sm:$0xff]  ;;  %575 = vmatpush.bf16.msra.mxu2 %v898_v3  ;;  %v905_v8 = vld [vmem:[%s1329_s26 + $0xf0] sm:$0xff]  ;;  %v904_v12 = vld [vmem:[%s1329_s26 + $0xe8] sm:$0xff] }
  0x50   : > { %588 = vmatpush.bf16.msra.mxu3 %v906_v4  ;;  %v879_v13 = vld [vmem:[%s1329_s26 + $0x20] sm:$0xff]  ;;  %v282_v15 = vld [vmem:[%s1322_s15] sm:$0xf]  ;;  %v877_v22 = vld [vmem:[%s1329_s26 + $0x10] sm:$0xff] }
  0x51   : > { %550 = vmatpush.bf16.msra.mxu0 %v881_v5  ;;  %v887_v14 = vld [vmem:[%s1329_s26 + $0x60] sm:$0xff]  ;;  %348 = vst [vmem:[#allocation1] ss:$9 sm:$0xff] %v282_v15  ;;  %v878_v18 = vld [vmem:[%s1329_s26 + $0x18] sm:$0xff]  ;;  %v885_v23 = vld [vmem:[%s1329_s26 + $0x50] sm:$0xff] }
  0x52   : > { %563 = vmatpush.bf16.msra.mxu1 %v889_v6  ;;  %v895_v16 = vld [vmem:[%s1329_s26 + $0xa0] sm:$0xff]  ;;  %v886_v19 = vld [vmem:[%s1329_s26 + $0x58] sm:$0xff]  ;;  %v893_v24 = vld [vmem:[%s1329_s26 + $0x90] sm:$0xff] }
  0x53   : > { %576 = vmatpush.bf16.msra.mxu2 %v897_v7  ;;  %v903_v17 = vld [vmem:[%s1329_s26 + $0xe0] sm:$0xff]  ;;  %v894_v20 = vld [vmem:[%s1329_s26 + $0x98] sm:$0xff]  ;;  %v901_v25 = vld [vmem:[%s1329_s26 + $0xd0] sm:$0xff] }
  0x54   : > { %589 = vmatpush.bf16.msra.mxu3 %v905_v8  ;;  %v902_v21 = vld [vmem:[%s1329_s26 + $0xd8] sm:$0xff]  ;;  %v876_v26 = vld [vmem:[%s1329_s26 + $0x8] sm:$0xff]  ;;  %v875_v30 = vld [vmem:[%s1329_s26] sm:$0xff] }
  0x55   : > { %551 = vmatpush.bf16.msra.mxu0 %v880_v9  ;;  %v884_v27 = vld [vmem:[%s1329_s26 + $0x48] sm:$0xff]  ;;  %v883_v31 = vld [vmem:[%s1329_s26 + $0x40] sm:$0xff]  ;;  %v281_v46 = vld [vmem:[#allocation2] sm:$0x3] }
  0x56   : > { %564 = vmatpush.bf16.msra.mxu1 %v888_v10  ;;  %v892_v28 = vld [vmem:[%s1329_s26 + $0x88] sm:$0xff]  ;;  %v891_v32 = vld [vmem:[%s1329_s26 + $0x80] sm:$0xff] }
  0x57   : > { %577 = vmatpush.bf16.msra.mxu2 %v896_v11  ;;  %v900_v29 = vld [vmem:[%s1329_s26 + $0xc8] sm:$0xff]  ;;  %v899_v33 = vld [vmem:[%s1329_s26 + $0xc0] sm:$0xff] }
  0x58   : > { %590 = vmatpush.bf16.msra.mxu3 %v904_v12  ;;  %v349_v34 = vld [vmem:[#allocation1] sm:$0xff]  ;;  %v350_v35 = vld [vmem:[#allocation1 + $0x9] sm:$0xff]  ;;  %v351_v36 = vld [vmem:[#allocation1 + $0x12] sm:$0xff] }
  0x59   : > { %552 = vmatpush.bf16.msra.mxu0 %v879_v13  ;;  %v352_v37 = vld [vmem:[#allocation1 + $0x1b] sm:$0xff] }
  0x5a   : > { %565 = vmatpush.bf16.msra.mxu1 %v887_v14 }
  0x5b   : > { %578 = vmatpush.bf16.msra.mxu2 %v895_v16 }
  0x5c   : > { %591 = vmatpush.bf16.msra.mxu3 %v903_v17 }
  0x5d   : > { %553 = vmatpush.bf16.msra.mxu0 %v878_v18 }
  0x5e   : > { %566 = vmatpush.bf16.msra.mxu1 %v886_v19 }
  0x5f   : > { %579 = vmatpush.bf16.msra.mxu2 %v894_v20 }
  0x60   : > { %592 = vmatpush.bf16.msra.mxu3 %v902_v21 }
  0x61   : > { %554 = vmatpush.bf16.msra.mxu0 %v877_v22 }
  0x62   : > { %567 = vmatpush.bf16.msra.mxu1 %v885_v23 }
  0x63   : > { %580 = vmatpush.bf16.msra.mxu2 %v893_v24 }
  0x64   : > { %593 = vmatpush.bf16.msra.mxu3 %v901_v25 }
  0x65   : > { %555 = vmatpush.bf16.msra.mxu0 %v876_v26 }
  0x66   : > { %568 = vmatpush.bf16.msra.mxu1 %v884_v27 }
  0x67   : > { %581 = vmatpush.bf16.msra.mxu2 %v892_v28 }
  0x68   : > { %594 = vmatpush.bf16.msra.mxu3 %v900_v29 }
  0x69   : > { %556 = vmatpush.bf16.msra.mxu0 %v875_v30 }
  0x6a   : > { %569 = vmatpush.bf16.msra.mxu1 %v883_v31 }
  0x6b   : > { %582 = vmatpush.bf16.msra.mxu2 %v891_v32 }
  0x6c   : > { %595 = vmatpush.bf16.msra.mxu3 %v899_v33  ;;  %557 = vmatmul.bf16.vlgmr.msra.gmra.mxu0 %v349_v34 }
  0x6d   : > { %570 = vmatmul.bf16.vlgmr.msra.gmra.mxu1 %v350_v35 }
  0x6e   : > { %583 = vmatmul.bf16.vlgmr.msra.gmra.mxu2 %v351_v36 }
  0x6f   : > { %596 = vmatmul.bf16.vlgmr.msra.gmra.mxu3 %v352_v37 }
  0xe9   : > { %v558_v38 = vpop.f32.mrf.mxu0 }
  0xea   : > { %v571_v39 = vpop.f32.mrf.mxu1 }
  0xeb   : > { %v572_v40 = vadd.f32 %v571_v39, %v558_v38 }
  0xf1   : > { %v584_v41 = vpop.f32.mrf.mxu2  ;;  %v560_v44 = vpop.f32.mrf.mxu0 }
  0xf2   : > { %v597_v42 = vpop.f32.mrf.mxu3  ;;  %v585_v43 = vadd.f32 %v584_v41, %v572_v40  ;;  %v573_v45 = vpop.f32.mrf.mxu1 }
  0xf4   : > { %v598_v47 = vadd.f32 %v597_v42, %v585_v43 }
  0xf6   : > { %v601_v48 = vadd.f32 %v598_v47, %v281_v46  ;;  %606 = sbr.rel (%p869_p1) target bundleno = 263 (0x107), region = 60 }
  0xf8   : > { %602 = vst [vmem:[#allocation2] sm:$0x3] %v601_v48 }
  0xf9   : > { %v586_v49 = vpop.f32.mrf.mxu2 }
  0xfa   : > { %v599_v50 = vpop.f32.mrf.mxu3 }
  0xfb   : > { %v608_v51 = vld [vmem:[#allocation8] sm:$0x7]  ;;  %v611_v53 = vld [vmem:[#allocation9] sm:$0x1f] }
  0xfc   : > { %609 = vst [vmem:[#allocation11] sm:$0x7] %v608_v51 }
  0xfd   : > { %610 = vst [vmem:[#allocation11 + $0x8] sm:$0x7] %v608_v51 }
  0xff   : > { %v607_v52 = vld [vmem:[#allocation2] sm:$0x3] }
 0x100   : > { %v614_v54 = vperm.slane %v607_v52, 0  ;;  %v613_v55 = vrot.slane %v607_v52, 1 }
 0x102   : > { %v618_v56 = vmul.f32 %v614_v54, %v611_v53  ;;  %v615_v57 = vperm.slane %v613_v55, 0 }
 0x104   : > { %620 = vst [vmem:[#allocation11 + $0x3] sm:$0x1f] %v618_v56  ;;  %v619_v58 = vmul.f32 %v615_v57, %v611_v53 }
 0x106   : > { %621 = vst [vmem:[#allocation11 + $0xb] sm:$0x1f] %v619_v58 }
 0x107 PF: > { %p942_p4 = scmp.eq.s32.totalorder %s1236_s19, 1  ;;  %s1189_s20 = smov [#allocation11]  }
 0x108   : > { %s627_s24 = sshll.u32 %s1189_s20, 4  ;;  %s629_s11 = sshll.u32 %s1400_s4, 4  ;;  %s628_s24 = int_to_ptr.vmem [resolvable:$true] %s627_s24  ;;  %s630_s11 = int_to_ptr.hbm [resolvable:$true] %s629_s11 }
 0x109   : > { %s1190_s5 = smov 128   ;;  %s1191_s7 = smov 8  }
 0x10a   : > { %920 = dma.vmem_to_hbm [thread:$0]  (%p942_p4), %s628_s24, 256, %s630_s11, [#allocation5], %s1190_s5, %s1190_s5, %s1191_s7  }
 0x10b   : > { %1165 = dma.done.wait (%p942_p4), [#allocation5], 256  }
 0x10c   : > { %1167 = vsyncadd (%p942_p4), [#allocation5], 4294967040 }
 0x10d PF: > { %p19_p5 = scmp.ge.s32.totalorder %s1264_s6, 4   ;;  %s1404_s15 = smov %s1174_s16 }
 0x10e   : > { %s1405_s16 = smov %s1178_s17  ;;  %s1406_s17 = smov %s1277_s10 }
 0x10f   : > { %s1407_s18 = smov %s1264_s6  ;;  %21 = sbr.rel (!%p19_p5) target bundleno = 7 (0x7), region = 102 }
 0x114   :  { %646 = vsyncpa [#allocation4], 1 }
 0x115   :  { %648 = vsyncpa [#allocation4 + $0x1], 1 }
 0x116   :  { %649 = vsyncpa [#allocation7], 1 }
 0x117   :  { %651 = vsyncpa [#allocation7 + $0x1], 1 }
 0x118   :  { %652 = vsyncpa [#allocation10], 1 }
 0x119   :  { %653 = vsyncpa [#allocation5], 1 }
 0x11a   :  { %655 = vsyncpa [#allocation5 + $0x1], 1 }

</bundles_post_ra>
